<compile_context>
chip_gen: v7x
topology: tpu7x:2x2x1
jax: 0.10.0
libtpu: 0.0.40
codegen_flags: <defaults>
</compile_context>

<pallas_src>
import math

import numpy as np
import jax
import jax.numpy as jnp
from jax.experimental import pallas as pl
from jax.experimental.pallas import tpu as pltpu


def _pe_add_kernel(x_ref, wpos_ref, hpos_ref, consts_ref, out_ref, pe_ref):
    # Build the (batch-independent) positional encoding once per (ct, hwt)
    # tile: the batch axis is innermost and the pe block index is constant
    # along it, so pe_ref stays resident in VMEM across the batch sweep.
    @pl.when(pl.program_id(2) == 0)
    def _build_pe():
        fx = consts_ref[0:1]  # (1, TC, 1)  freq*scale_x (0 on y-channels)
        fy = consts_ref[1:2]  # (1, TC, 1)  freq*scale_y (0 on x-channels)
        ph = consts_ref[2:3]  # (1, TC, 1)  pi/2 on cos channels, else 0
        # Single fused sin per pe element.  NOTE: cos(t) is computed as
        # sin(t + pi/2); for very large positions*scale the float32 shifted
        # argument can differ from torch.cos by ~1e-4 (range-reduction ulp).
        arg = wpos_ref[...] * fx + hpos_ref[...] * fy + ph  # (1, TC, THW)
        pe_ref[...] = jnp.sin(arg)

    # Steady state: HBM-bound broadcast add (accumulate in f32, cast to out).
    out_ref[...] = (x_ref[...].astype(jnp.float32) + pe_ref[...]).astype(out_ref.dtype)


def _choose_tiles(C, HW, x_bytes, target_bytes=4 << 20):
    """Pick (TC, THW): channel / flattened-spatial tile sizes.

    * channel tile granularity follows sublane packing of the narrowest dtype
      in the block (8 for f32, 16 for bf16, 32 for int8/fp8),
    * prefer the full HW extent (one contiguous lane-dense DMA), only tiling
      HW (in multiples of 128) when even the smallest channel tile overflows,
    * keep >= 2 parallel tiles when possible so v7x megacore gets work.
    """
    g = max(8, 32 // max(1, x_bytes))
    tc_cands = [d for d in range(g, C + 1, g) if C % d == 0] or [C]
    hw_cands = [d for d in range(128, HW + 1, 128) if HW % d == 0] or [HW]
    blk_bytes = max(x_bytes, 4)  # pe block is float32

    if min(tc_cands) * HW * blk_bytes <= target_bytes:
        thw = HW
    else:
        fit_hw = [d for d in hw_cands if min(tc_cands) * d * blk_bytes <= target_bytes]
        thw = max(fit_hw) if fit_hw else min(hw_cands)

    fit_tc = [d for d in tc_cands if d * thw * blk_bytes <= target_bytes]
    tc = max(fit_tc) if fit_tc else min(tc_cands)

    # Megacore: ensure >= 2 parallel (ct, hwt) tiles when the channel axis can
    # be split without breaking sublane granularity.
    if (C // tc) * (HW // thw) < 2:
        halves = [d for d in tc_cands if d <= C // 2]
        if halves:
            tc = max(halves)
    return tc, thw


def _vmem_limit_bytes(TC, THW, x_bytes, return_pe):
    """Explicit scoped-VMEM limit derived from the actual buffer footprint."""
    blk_x = TC * THW * x_bytes
    blk_pe = TC * THW * 4
    est = 2 * blk_x                       # x input (double-buffered)
    est += 2 * blk_x                      # out output (double-buffered)
    est += (2 if return_pe else 1) * blk_pe
    est += 2 * 2 * THW * 4                # w_pos / h_pos
    est += 2 * 3 * max(TC, 8) * 128 * 4   # packed consts (padded, tiny)
    limit = int(est * 1.25) + (4 << 20)
    # Clamp to [32 MiB, 64 MiB]: above v5e's 16 MiB default, within v7x's
    # 64 MiB physical VMEM per TensorCore.
    return max(32 << 20, min(limit, 64 << 20))


def position_encoding_sine(x, *, pre_scaling=(None, None), scaling=None, return_pe=True):
    """Pallas equivalent of PositionEncodingSine.forward.

    Args:
        x: [N, C, H, W] array (C == d_model, divisible by 4).
        pre_scaling: ((train_h, train_w), (test_h, test_w)) or (None, None).
        scaling: optional (scale_y, scale_x); overrides pre_scaling like the
                 reference forward's `scaling` argument.
        return_pe: if True return (x + pe, pe); if False return only x + pe
                 (pe stays in VMEM scratch, no HBM writeback).
    Returns:
        (x + pe, pe) with pe of shape [1, C, H, W] (float32), or just x + pe.
    """
    N, C, H, W = x.shape
    d_model = C
    assert d_model % 4 == 0, "d_model must be divisible by 4"

    if scaling is None:
        if pre_scaling[0] is not None and pre_scaling[1] is not None:
            train_res, test_res = pre_scaling
            # Reproduces the reference exactly, including the quirk of the
            # y-scale dividing by test_res[1] (not test_res[0]).
            scale_x = float(train_res[1]) / float(test_res[1])
            scale_y = float(train_res[0]) / float(test_res[1])
        else:
            scale_x = 1.0
            scale_y = 1.0
    else:
        scale_y = float(scaling[0])
        scale_x = float(scaling[1])

    # Per-channel constants, built at trace time (no per-element exp at runtime):
    #   freq[c] = exp(2*(c//4) * (-ln(10000)/(d_model//2)))  == div_term[c//4]
    #   fx/fy   = freq*scale for x/y channels, zero otherwise
    #   ph      = pi/2 on cos channels (cos(t) == sin(t + pi/2)), else 0
    c = np.arange(C)
    freq = np.exp(2.0 * (c // 4) * (-math.log(10000.0) / (d_model // 2)))
    mode = c % 4
    is_y = mode >= 2
    fx = np.where(is_y, 0.0, freq * scale_x)
    fy = np.where(is_y, freq * scale_y, 0.0)
    ph = np.where(mode % 2 == 1, np.pi / 2, 0.0)
    consts = np.stack([fx, fy, ph]).astype(np.float32).reshape(3, C, 1)

    # Precomputed 1-based positions over the flattened H*W axis (lane axis).
    HW = H * W
    w_pos = np.tile(np.arange(1, W + 1, dtype=np.float32), H).reshape(1, 1, HW)
    h_pos = np.repeat(np.arange(1, H + 1, dtype=np.float32), W).reshape(1, 1, HW)

    x_flat = x.reshape(N, C, HW)  # lane-dense last dim
    x_bytes = jnp.dtype(x.dtype).itemsize

    TC, THW = _choose_tiles(C, HW, x_bytes)
    n_ct, n_hwt = C // TC, HW // THW

    in_specs = [
        pl.BlockSpec((1, TC, THW), lambda ct, hw, n: (n, ct, hw)),   # x
        pl.BlockSpec((1, 1, THW), lambda ct, hw, n: (0, 0, hw)),     # w_pos
        pl.BlockSpec((1, 1, THW), lambda ct, hw, n: (0, 0, hw)),     # h_pos
        pl.BlockSpec((3, TC, 1), lambda ct, hw, n: (0, ct, 0)),      # consts
    ]
    out_specs = [pl.BlockSpec((1, TC, THW), lambda ct, hw, n: (n, ct, hw))]
    out_shapes = [jax.ShapeDtypeStruct((N, C, HW), x.dtype)]
    scratch_shapes = []
    if return_pe:
        # pe is batch-independent: constant block index along the inner
        # ("arbitrary") batch axis -> written once, flushed at tile change.
        out_specs.append(pl.BlockSpec((1, TC, THW), lambda ct, hw, n: (0, ct, hw)))
        out_shapes.append(jax.ShapeDtypeStruct((1, C, HW), jnp.float32))
    else:
        scratch_shapes.append(pltpu.VMEM((1, TC, THW), jnp.float32))

    cost = pl.CostEstimate(
        flops=2 * N * C * HW + 4 * C * HW,
        transcendentals=C * HW,
        bytes_accessed=2 * N * C * HW * x_bytes + (C * HW * 4 if return_pe else 0),
    )

    results = pl.pallas_call(
        _pe_add_kernel,
        out_shape=tuple(out_shapes),
        grid_spec=pltpu.PrefetchScalarGridSpec(
            num_scalar_prefetch=0,
            grid=(n_ct, n_hwt, N),  # batch innermost -> pe resident across it
            in_specs=in_specs,
            out_specs=tuple(out_specs),
            scratch_shapes=tuple(scratch_shapes),
        ),
        compiler_params=pltpu.CompilerParams(
            # ct / hwt tiles write disjoint out & pe blocks -> safe to shard
            # across TensorCores; the batch axis MUST stay sequential (pe init).
            dimension_semantics=("parallel", "parallel", "arbitrary"),
            vmem_limit_bytes=_vmem_limit_bytes(TC, THW, x_bytes, return_pe),
        ),
        cost_estimate=cost,
    )(x_flat, jnp.asarray(w_pos), jnp.asarray(h_pos), jnp.asarray(consts))

    if return_pe:
        out_flat, pe_flat = results
        return out_flat.reshape(N, C, H, W), pe_flat.reshape(1, C, H, W)
    (out_flat,) = results
    return out_flat.reshape(N, C, H, W)


def _reference_jax(x, scale_y, scale_x):
    """Pure-JAX reference mirroring the torch module (for correctness checks)."""
    N, C, H, W = x.shape
    d_model = C
    y_pos = jnp.cumsum(jnp.ones((H, W), jnp.float32), axis=0)[None] * scale_y
    x_pos = jnp.cumsum(jnp.ones((H, W), jnp.float32), axis=1)[None] * scale_x
    div_term = jnp.exp(
        jnp.arange(0, d_model // 2, 2, dtype=jnp.float32)
        * (-math.log(10000.0) / (d_model // 2))
    )[:, None, None]
    pe = jnp.zeros((d_model, H, W), jnp.float32)
    pe = pe.at[0::4].set(jnp.sin(x_pos * div_term))
    pe = pe.at[1::4].set(jnp.cos(x_pos * div_term))
    pe = pe.at[2::4].set(jnp.sin(y_pos * div_term))
    pe = pe.at[3::4].set(jnp.cos(y_pos * div_term))
    pe = pe[None]
    return x + pe, pe


if __name__ == "__main__":
    key = jax.random.PRNGKey(0)
    N, C, H, W = 2, 8, 16, 16  # d_model = C = 8
    x = jax.random.normal(key, (N, C, H, W), dtype=jnp.float32)

    # Path 1: pre_scaling (scale_x = 2.0, scale_y = 1.5 due to the reference's
    # y/test_res[1] quirk), pe returned as a real HBM output.
    pre_scaling = ((480, 640), (240, 320))
    out, pe = position_encoding_sine(x, pre_scaling=pre_scaling)
    out = jax.block_until_ready(out)
    pe = jax.block_until_ready(pe)

    ref_out, ref_pe = _reference_jax(x, 480.0 / 320.0, 640.0 / 320.0)
    assert out.shape == (N, C, H, W) and pe.shape == (1, C, H, W)
    assert jnp.allclose(out, ref_out, atol=2e-5, rtol=1e-5)
    assert jnp.allclose(pe, ref_pe, atol=2e-5, rtol=1e-5)

    # Path 2: scaling= override, pe kept in VMEM scratch (no HBM writeback).
    out2 = position_encoding_sine(x, scaling=(1.25, 0.75), return_pe=False)
    out2 = jax.block_until_ready(out2)
    ref_out2, _ = _reference_jax(x, 1.25, 0.75)
    assert jnp.allclose(out2, ref_out2, atol=2e-5, rtol=1e-5)

    print("KERNEL_OK")
</pallas_src>

<mosaic_0001>
module attributes {stable_mosaic.version = 11 : i64} {
  func.func @_pe_add_kernel(%arg0: i32, %arg1: i32, %arg2: i32, %arg3: memref<1x8x256xf32, #tpu.memory_space<vmem>>, %arg4: memref<1x1x256xf32, #tpu.memory_space<vmem>>, %arg5: memref<1x1x256xf32, #tpu.memory_space<vmem>>, %arg6: memref<3x8x1xf32, #tpu.memory_space<vmem>>, %arg7: memref<1x8x256xf32, #tpu.memory_space<vmem>>, %arg8: memref<1x8x256xf32, #tpu.memory_space<vmem>>) attributes {dimension_semantics = [#tpu.dimension_semantics<parallel>, #tpu.dimension_semantics<parallel>, #tpu.dimension_semantics<arbitrary>], iteration_bounds = array<i64: 1, 1, 2>, scalar_prefetch = 0 : i64, scratch_operands = 0 : i64, tpu.core_type = #tpu.core_type<tc>, window_params = [{transform_indices = @transform_0, window_bounds = array<i64: 1, 8, 256>}, {transform_indices = @transform_1, window_bounds = array<i64: 1, 1, 256>}, {transform_indices = @transform_2, window_bounds = array<i64: 1, 1, 256>}, {transform_indices = @transform_3, window_bounds = array<i64: 3, 8, 1>}, {transform_indices = @transform_4, window_bounds = array<i64: 1, 8, 256>}, {transform_indices = @transform_5, window_bounds = array<i64: 1, 8, 256>}]} {
    %c0_i32 = arith.constant 0 : i32
    %0 = arith.cmpi eq, %arg2, %c0_i32 : i32
    %1 = arith.extui %0 : i1 to i32
    %c0_i32_0 = arith.constant 0 : i32
    %2 = arith.cmpi ne, %1, %c0_i32_0 : i32
    scf.if %2 {
      %c0_9 = arith.constant 0 : index
      %c0_10 = arith.constant 0 : index
      %c0_11 = arith.constant 0 : index
      %7 = vector.load %arg6[%c0_9, %c0_10, %c0_11] : memref<3x8x1xf32, #tpu.memory_space<vmem>>, vector<1x8x1xf32>
      %c1 = arith.constant 1 : index
      %c0_12 = arith.constant 0 : index
      %c0_13 = arith.constant 0 : index
      %8 = vector.load %arg6[%c1, %c0_12, %c0_13] : memref<3x8x1xf32, #tpu.memory_space<vmem>>, vector<1x8x1xf32>
      %c2 = arith.constant 2 : index
      %c0_14 = arith.constant 0 : index
      %c0_15 = arith.constant 0 : index
      %9 = vector.load %arg6[%c2, %c0_14, %c0_15] : memref<3x8x1xf32, #tpu.memory_space<vmem>>, vector<1x8x1xf32>
      %c0_16 = arith.constant 0 : index
      %c0_17 = arith.constant 0 : index
      %c0_18 = arith.constant 0 : index
      %10 = vector.load %arg4[%c0_16, %c0_17, %c0_18] : memref<1x1x256xf32, #tpu.memory_space<vmem>>, vector<1x1x256xf32>
      %11 = vector.broadcast %10 : vector<1x1x256xf32> to vector<1x8x256xf32>
      %12 = vector.broadcast %7 : vector<1x8x1xf32> to vector<1x8x256xf32>
      %13 = arith.mulf %11, %12 : vector<1x8x256xf32>
      %c0_19 = arith.constant 0 : index
      %c0_20 = arith.constant 0 : index
      %c0_21 = arith.constant 0 : index
      %14 = vector.load %arg5[%c0_19, %c0_20, %c0_21] : memref<1x1x256xf32, #tpu.memory_space<vmem>>, vector<1x1x256xf32>
      %15 = vector.broadcast %14 : vector<1x1x256xf32> to vector<1x8x256xf32>
      %16 = vector.broadcast %8 : vector<1x8x1xf32> to vector<1x8x256xf32>
      %17 = arith.mulf %15, %16 : vector<1x8x256xf32>
      %18 = arith.addf %13, %17 : vector<1x8x256xf32>
      %19 = vector.broadcast %9 : vector<1x8x1xf32> to vector<1x8x256xf32>
      %20 = arith.addf %18, %19 : vector<1x8x256xf32>
      %21 = math.sin %20 : vector<1x8x256xf32>
      %c0_22 = arith.constant 0 : index
      %c0_23 = arith.constant 0 : index
      %c0_24 = arith.constant 0 : index
      %22 = vector.load %arg8[%c0_22, %c0_23, %c0_24] : memref<1x8x256xf32, #tpu.memory_space<vmem>>, vector<1x8x256xf32>
      tpu.vector_store %arg8[%c0_22, %c0_23, %c0_24], %21 {strides = array<i32>} : memref<1x8x256xf32, #tpu.memory_space<vmem>>, vector<1x8x256xf32>,
    } else {
    }
    %c0 = arith.constant 0 : index
    %c0_1 = arith.constant 0 : index
    %c0_2 = arith.constant 0 : index
    %3 = vector.load %arg3[%c0, %c0_1, %c0_2] : memref<1x8x256xf32, #tpu.memory_space<vmem>>, vector<1x8x256xf32>
    %c0_3 = arith.constant 0 : index
    %c0_4 = arith.constant 0 : index
    %c0_5 = arith.constant 0 : index
    %4 = vector.load %arg8[%c0_3, %c0_4, %c0_5] : memref<1x8x256xf32, #tpu.memory_space<vmem>>, vector<1x8x256xf32>
    %5 = arith.addf %3, %4 : vector<1x8x256xf32>
    %c0_6 = arith.constant 0 : index
    %c0_7 = arith.constant 0 : index
    %c0_8 = arith.constant 0 : index
    %6 = vector.load %arg7[%c0_6, %c0_7, %c0_8] : memref<1x8x256xf32, #tpu.memory_space<vmem>>, vector<1x8x256xf32>
    tpu.vector_store %arg7[%c0_6, %c0_7, %c0_8], %5 {strides = array<i32>} : memref<1x8x256xf32, #tpu.memory_space<vmem>>, vector<1x8x256xf32>,
    return
  }
  func.func @transform_0(%arg0: i32, %arg1: i32, %arg2: i32) -> (i32, i32, i32) {
    %c0_i32 = arith.constant 0 : i32
    return %arg2, %arg0, %arg1 : i32, i32, i32
  }
  func.func @transform_1(%arg0: i32, %arg1: i32, %arg2: i32) -> (i32, i32, i32) {
    %c0_i32 = arith.constant 0 : i32
    %c0_i32_0 = arith.constant 0 : i32
    %c0_i32_1 = arith.constant 0 : i32
    return %c0_i32, %c0_i32_0, %arg1 : i32, i32, i32
  }
  func.func @transform_2(%arg0: i32, %arg1: i32, %arg2: i32) -> (i32, i32, i32) {
    %c0_i32 = arith.constant 0 : i32
    %c0_i32_0 = arith.constant 0 : i32
    %c0_i32_1 = arith.constant 0 : i32
    return %c0_i32, %c0_i32_0, %arg1 : i32, i32, i32
  }
  func.func @transform_3(%arg0: i32, %arg1: i32, %arg2: i32) -> (i32, i32, i32) {
    %c0_i32 = arith.constant 0 : i32
    %c0_i32_0 = arith.constant 0 : i32
    %c0_i32_1 = arith.constant 0 : i32
    return %c0_i32, %arg0, %c0_i32_0 : i32, i32, i32
  }
  func.func @transform_4(%arg0: i32, %arg1: i32, %arg2: i32) -> (i32, i32, i32) {
    %c0_i32 = arith.constant 0 : i32
    return %arg2, %arg0, %arg1 : i32, i32, i32
  }
  func.func @transform_5(%arg0: i32, %arg1: i32, %arg2: i32) -> (i32, i32, i32) {
    %c0_i32 = arith.constant 0 : i32
    %c0_i32_0 = arith.constant 0 : i32
    return %c0_i32, %arg0, %arg1 : i32, i32, i32
  }
}

</mosaic_0001>

<bundles_post_ra>
// kernel: tpu_custom_call.1
= control target key start
LH: loop header
LB: loop body
LE: loop exit
PB: predicated region body
PF: predicated region fallthrough
CT: control target
= control target key end

     0   :  { %11 = vsyncpa [#allocation3], 0  ;;  %s1392_s0 = inlined_call_operand.hbm [shape: f32[2,8,256], index: 0, kind: input, shape index: {}]   ;;  %s1393_s1 = inlined_call_operand.vmem [shape: f32[1,1,256], index: 1, kind: input, shape index: {}]   ;;  %s1394_s2 = inlined_call_operand.vmem [shape: f32[1,1,256], index: 2, kind: input, shape index: {}]   ;;  %s1395_s3 = inlined_call_operand.vmem [shape: f32[3,8,1], index: 3, kind: input, shape index: {}]   ;;  %s1396_s4 = inlined_call_operand.hbm [shape: f32[2,8,256], index: 4, kind: output, shape index: {0}]   ;;  %s1397_s5 = inlined_call_operand.hbm [shape: f32[1,8,256], index: 5, kind: output, shape index: {1}]  }
   0x1   :  { %13 = vsyncpa [#allocation3 + $0x1], 0 }
   0x2   :  { %14 = vsyncpa [#allocation4], 0 }
   0x3   :  { %16 = vsyncpa [#allocation4 + $0x1], 0 }
   0x4   :  { %17 = vsyncpa [#allocation7], 0  ;;  %s1102_s18 = smov 0   ;;  %s1104_s19 = smov 0  }
   0x5   :  { %s1106_s20 = smov 0   ;;  %s1108_s21 = smov 0  }
   0x6   :  { %s1110_s22 = smov 0   ;;  %s1112_s23 = smov 0  }
   0x7 LB: > { %s791_s24 = sadd.s32 4294967295, %s1060_s23   ;;  %s792_s25 = sadd.s32 4294967294, %s1060_s23   ;;  %s1060_s23 = sphi %s1112_s23, %s23_s23   ;;  %s1056_s22 = sphi %s1110_s22, %s1417_s22   ;;  %s1052_s21 = sphi %s1108_s21, %s1416_s21   ;;  %s1048_s20 = sphi %s1106_s20, %s1415_s20   ;;  %s1044_s19 = sphi %s1104_s19, %s1414_s19   ;;  %s1040_s18 = sphi %s1102_s18, %s1413_s18  }
   0x8   : > { %s35_s26 = sadd.s32 1, %s1056_s22  ;;  %s53_s27 = sadd.s32 1, %s1048_s20 }
   0x9   : > { %p36_p0 = scmp.ge.s32.totalorder %s35_s26, 2  ;;  %p60_p1 = scmp.ne.s32.totalorder %s1048_s20, %s1044_s19 }
   0xa   : > { %p61_p2 = scmp.eq.s32.totalorder %s1060_s23, 0  ;;  %p66_p3 = scmp.ne.s32.totalorder %s1044_s19, %s1040_s18 }
   0xb   : > { %s1419_s26 = smov (%p36_p0, %s35_s26), 0  ;;  %p67_p5 = scmp.eq.s32.totalorder %s791_s24, 0 }
   0xc   : > { %p1143_p4 = por %p61_p2, %p60_p1  ;;  %s46_s29 = ssub.s32 %s1056_s22, %s1419_s26 }
   0xd   : > { %p1149_p6 = scmp.eq.s32.totalorder %s791_s24, 1  ;;  %p51_p7 = scmp.eq.s32.totalorder %s46_s29, 0 }
   0xe   : > { %p1153_p8 = por %p67_p5, %p66_p3  ;;  %p178_p10 = scmp.eq.s32.totalorder %s792_s25, 1 }
   0xf   : > { %s1402_s30 = scalar_select %p1149_p6, 1, 0 }
  0x10   : > { %p1159_p9 = por %p1149_p6, %p60_p1  ;;  %p1166_p11 = por %p178_p10, %p66_p3 }
  0x11   : > { %s1164_s8 = scalar_select %p51_p7, %s1048_s20, %s53_s27  }
  0x12   : > { %s1404_s7 = scalar_select %p1159_p9, 1, 0 }
  0x13   : > { %s1405_s9 = scalar_select %p1166_p11, 1, 0 }
  0x14   : > { %p848_p13 = scmp.lt.s32.totalorder %s1060_s23, 2  ;;  %s249_s10 = sand.u32 1, %s1048_s20  }
  0x15   : > { %s798_s11 = sshll.u32 %s249_s10, 4  ;;  %s822_s12 = sshll.u32 %s1056_s22, 8 }
  0x16   : > { %s1177_s15 = scalar_lea.hbm %s1392_s0, %s822_s12  ;;  %s253_s16 = scalar_lea.vmem [#allocation2], %s798_s11 }
  0x17   : > { %s265_s17 = sshll.u32 %s253_s16, 4  ;;  %p1183_p0 = pnand %p848_p13, %p1143_p4  ;;  %s1179_s17 = int_to_ptr.vmem [resolvable:$true] %s265_s17 }
  0x18   : > { %s250_s25 = scalar_lea.sflag [#allocation3], %s249_s10  ;;  %s918_s27 = scalar_lea.hbm %s1177_s15, 256 }
  0x19   : > { %p919_p3 = scmp.ne.s32.totalorder %s1177_s15, %s918_s27  ;;  %p920_p5 = pneg %p1183_p0 }
  0x1a   : > { %s923_s28 = scalar_lea.hbm %s1392_s0, 512  ;;  %p924_p4 = scmp.lt.u32.totalorder %s1177_s15, %s1392_s0 }
  0x1b   : > { %p921_p7 = pnand %p920_p5, %p919_p3  ;;  %p925_p13 = scmp.lt.u32.totalorder %s923_s28, %s918_s27 }
  0x1c   : > { %p927_p1 = scmp.lt.u32.totalorder %s918_s27, %s1177_s15 }
  0x1d   : > { %p922_p10 = pneg %p921_p7  ;;  %p926_p12 = por %p925_p13, %p924_p4 }
  0x1f   : > { %p928_p2 = por %p927_p1, %p926_p12 }
  0x21   : > { %p929_p11 = pnand %p928_p2, %p922_p10 }
  0x23   : > { %932 = shalt.err (!%p929_p11)
}
  0x24   : > { %s933_s10 = scalar_lea.vmem %s1179_s17, 256  ;;  %s1062_s14 = smov [#allocation2]  }
  0x25   : > { %p934_p3 = scmp.ne.s32.totalorder %s1179_s17, %s933_s10  ;;  %s938_s16 = sshll.u32 %s1062_s14, 4  ;;  %s939_s16 = int_to_ptr.vmem [resolvable:$false] %s938_s16 }
  0x26   : > { %s940_s29 = scalar_lea.vmem %s939_s16, 512  ;;  %p941_p9 = scmp.lt.s32.totalorder %s1179_s17, %s939_s16 }
  0x27   : > { %p936_p7 = pnand %p934_p3, %p920_p5  ;;  %p942_p4 = scmp.lt.s32.totalorder %s940_s29, %s933_s10 }
  0x29   : > { %p937_p6 = pneg %p936_p7  ;;  %p943_p13 = por %p942_p4, %p941_p9 }
  0x2b   : > { %p944_p12 = pnand %p943_p13, %p937_p6 }
  0x2d   : > { %947 = shalt.err (!%p944_p12)
}
  0x2e   : > { %843 = dma.hbm_to_vmem [thread:$0]  (!%p1183_p0), %s1177_s15, 256, %s1179_s17, %s250_s25  }
  0x2f   : > { %p1407_p11 = scmp.lt.s32.totalorder %s1060_s23, 3  ;;  %p1408_p1 = scmp.ge.s32.totalorder %s1060_s23, 1 }
  0x31   : > { %p271_p2 = pnand %p1408_p1, %p1407_p11 }
  0x32   : > { %s1219_s27 = sand.u32 (!%p271_p2), 1, %s1044_s19  }
  0x33   : > { %274 = sbr.rel (%p271_p2) target bundleno = 339 (0x153), region = 36  ;;  %s802_s11 = sshll.u32 (!%p271_p2), %s1219_s27, 4 }
  0x34   : > { %s277_s28 = scalar_lea.sflag (!%p271_p2), [#allocation3], %s1219_s27  ;;  %s1223_s12 = scalar_lea.vmem (!%p271_p2), [#allocation2], %s802_s11 }
  0x3a   : > { %1027 = dma.done.wait (%p1153_p8), %s277_s28, 256  }
  0x3b   : > { %1029 = vsyncadd (%p1153_p8), %s277_s28, 4294967040  ;;  %s1229_s15 = scalar_lea.vmem [#allocation5], %s802_s11  ;;  %p804_p6 = scmp.ne.s32.totalorder %s1052_s21, 0 }
  0x3c   : > { %v340_v0 = vld [vmem:[%s1395_s3] sm:$0xff] (!%p804_p6)  ;;  %v806_v1 = vld [vmem:[%s1395_s3 + $0x10] sm:$0xff] (!%p804_p6)  ;;  %v1063_v2 = vmov (!%p804_p6), 0   ;;  %v805_v3 = vld [vmem:[%s1395_s3 + $0x8] sm:$0xff] (!%p804_p6)  ;;  %v347_v4 = vlaneseq (!%p804_p6)  ;;  %v1064_v45 = vmov (!%p804_p6), 683565275  }
  0x3d   : > { %339 = sbr.rel (%p804_p6) target bundleno = 290 (0x122), region = 44  ;;  %908 = vset.pattern.permute.xlu0 (!%p804_p6), %v1063_v2  ;;  %909 = vset.pattern.permute.xlu1 (!%p804_p6), %v1063_v2  ;;  %v345_v8 = vld [vmem:[%s1393_s1] sm:$0x3] (!%p804_p6)  ;;  %v1065_v49 = vmov (!%p804_p6), 2475754826  }
  0x3e   : > { %359 = vperm.xlu0 (!%p804_p6), %908, %v340_v0   ;;  %387 = vperm.xlu1 (!%p804_p6), %909, %v806_v1   ;;  %v348_v5 = vshrl.u32 (!%p804_p6), %v347_v4, 7  ;;  %v364_v9 = vld [vmem:[%s1394_s2] sm:$0x3] (!%p804_p6)  ;;  %v1066_v51 = vmov (!%p804_p6), 2131351028  }
  0x3f   : > { %v1067_v53 = vmov (!%p804_p6), 2102212464   ;;  %v1068_v55 = vmov (!%p804_p6), 920167782   ;;  %v1069_v62 = vmov (!%p804_p6), 1326507024  }
  0x40   : > { %v349_v6 = vsub.s32 (!%p804_p6), 0, %v348_v5  ;;  %v353_v7 = vsub.s32 (!%p804_p6), 1, %v348_v5 }
  0x42   : > { %378 = vperm.xlu0 (!%p804_p6), %908, %v805_v3   ;;  %v350_v11 = vrot.slane (!%p804_p6), %v345_v8, %v349_v6  ;;  %v354_v12 = vrot.slane (!%p804_p6), %v345_v8, %v353_v7  ;;  %v369_v13 = vrot.slane (!%p804_p6), %v364_v9, %v349_v6  ;;  %v373_v14 = vrot.slane (!%p804_p6), %v364_v9, %v353_v7 }
  0xbd   : > { %v360_v10 = vpop.permute.xlu0 %359  ;;  %v388_v20 = vpop.permute.xlu1 %387 }
  0xbe   : > { %v362_v16 = vmul.f32 %v360_v10, %v350_v11  ;;  %v363_v17 = vmul.f32 %v360_v10, %v354_v12 }
  0xc1   : > { %v379_v15 = vpop.permute.xlu0 %378 }
  0xc2   : > { %v381_v18 = vmul.f32 %v379_v15, %v369_v13  ;;  %v382_v19 = vmul.f32 %v379_v15, %v373_v14 }
  0xc4   : > { %v383_v21 = vadd.f32 %v381_v18, %v362_v16  ;;  %v384_v22 = vadd.f32 %v382_v19, %v363_v17 }
  0xc6   : > { %v1247_v23 = vadd.f32 %v388_v20, %v383_v21  ;;  %v1249_v24 = vadd.f32 %v388_v20, %v384_v22 }
  0xc8   : > { %v392_v25 = vand.u32 2147483647, %v1247_v23  ;;  %v395_v26 = vand.u32 2139095040, %v1247_v23  ;;  %v499_v27 = vand.u32 2139095040, %v1249_v24  ;;  %v496_v30 = vand.u32 2147483647, %v1249_v24 }
  0xc9   : > { %vm394_vm14 = vcmp.lt.s32.totalorder %v1247_v23, 0 }
  0xca   : > { %v396_v28 = vshrl.u32 %v395_v26, 23  ;;  %v399_v29 = vand.u32 8388607, %v392_v25  ;;  %v500_v31 = vshrl.u32 %v499_v27, 23  ;;  %v1259_v36 = vand.u32 8388607, %v496_v30 }
  0xcb   : > { %vm393_vm15 = vcmp.le.f32.partialorder %v392_v25, 0.7853982 }
  0xcc   : > { %v807_v32 = vadd.s32 4294967169, %v396_v28  ;;  %v811_v33 = vadd.s32 4294967169, %v500_v31  ;;  %v400_v35 = vor.u32 8388608, %v399_v29  ;;  %v504_v43 = vor.u32 8388608, %v1259_v36 }
  0xce   : > { %v402_v34 = vadd.s32 1, %v807_v32  ;;  %v506_v37 = vadd.s32 1, %v811_v33  ;;  %v1261_v42 = vshll.u32 %v400_v35, 8 }
  0xd0   : > { %vm403_vm0 = vcmp.gt.s32.totalorder %v402_v34, 0  ;;  %vm507_vm1 = vcmp.gt.s32.totalorder %v506_v37, 0 }
  0xd1   : > { %v404_v38 = vsel %vm403_vm0, %v402_v34, 0  ;;  %v508_v41 = vsel %vm507_vm1, %v506_v37, 0  ;;  %v544_v37 = vshll.u32 %v504_v43, 8  ;;  %vm498_vm0 = vcmp.lt.s32.totalorder %v1249_v24, 0 }
  0xd2   : > { %v405_v39 = vshrl.u32 %v404_v38, 5  ;;  %v406_v40 = vand.u32 31, %v404_v38  ;;  %v1264_v47 = vshrl.u32 %v508_v41, 5  ;;  %v510_v48 = vand.u32 31, %v508_v41 }
  0xd3   : > { %vm497_vm1 = vcmp.le.f32.partialorder %v496_v30, 0.7853982 }
  0xd4   : > { %v407_v44 = vsub.s32 32, %v406_v40  ;;  %v409_v46 = vshll.u32 %v1064_v45, %v406_v40  ;;  %v412_v50 = vshll.u32 %v1065_v49, %v406_v40  ;;  %v415_v52 = vshll.u32 %v1066_v51, %v406_v40 }
  0xd5   : > { %v418_v54 = vshll.u32 %v1067_v53, %v406_v40  ;;  %v421_v56 = vshll.u32 %v1068_v55, %v406_v40  ;;  %vm424_vm2 = vcmp.lt.s32.totalorder %v405_v39, 1  ;;  %vm425_vm3 = vcmp.lt.s32.totalorder %v405_v39, 2 }
  0xd6   : > { %v410_v57 = vshrl.u32 %v1065_v49, %v407_v44  ;;  %v413_v58 = vshrl.u32 %v1066_v51, %v407_v44  ;;  %v416_v59 = vshrl.u32 %v1067_v53, %v407_v44  ;;  %v408_v60 = vshrl.u32 %v1064_v45, %v407_v44 }
  0xd7   : > { %v419_v61 = vshrl.u32 %v1068_v55, %v407_v44  ;;  %v422_v63 = vshrl.u32 %v1069_v62, %v407_v44  ;;  %v511_v3 = vsub.s32 32, %v510_v48  ;;  %vm426_vm4 = vcmp.lt.s32.totalorder %v405_v39, 3 }
  0xd8   : > { %v411_v0 = vor.u32 %v410_v57, %v409_v46  ;;  %v414_v1 = vor.u32 %v413_v58, %v412_v50  ;;  %v417_v2 = vor.u32 %v416_v59, %v415_v52  ;;  %vm427_vm5 = vcmp.lt.s32.totalorder %v405_v39, 4 }
  0xd9   : > { %v420_v4 = vor.u32 %v419_v61, %v418_v54  ;;  %v423_v5 = vor.u32 %v422_v63, %v421_v56  ;;  %v513_v13 = vshll.u32 %v1064_v45, %v510_v48  ;;  %v514_v16 = vshrl.u32 %v1065_v49, %v511_v3 }
  0xda   : > { %v428_v6 = vsel %vm424_vm2, %v408_v60, %v411_v0  ;;  %v429_v7 = vsel %vm427_vm5, %v417_v2, 2102212464  ;;  %v432_v8 = vsel %vm424_vm2, %v411_v0, %v414_v1  ;;  %v436_v9 = vsel %vm424_vm2, %v414_v1, %v417_v2 }
  0xdb   : > { %v430_v10 = vsel %vm426_vm4, %v414_v1, %v429_v7  ;;  %v433_v11 = vsel %vm427_vm5, %v420_v4, 920167782  ;;  %v437_v12 = vsel %vm427_vm5, %v423_v5, 1326507024  ;;  %v516_v17 = vshll.u32 %v1065_v49, %v510_v48 }
  0xdc   : > { %v434_v14 = vsel %vm426_vm4, %v417_v2, %v433_v11  ;;  %v438_v15 = vsel %vm426_vm4, %v420_v4, %v437_v12  ;;  %v431_v18 = vsel %vm425_vm3, %v428_v6, %v430_v10  ;;  %v517_v21 = vshrl.u32 %v1066_v51, %v511_v3 }
  0xdd   : > { %v435_v19 = vsel %vm425_vm3, %v432_v8, %v434_v14  ;;  %v439_v20 = vsel %vm425_vm3, %v436_v9, %v438_v15  ;;  %v515_v29 = vor.u32 %v514_v16, %v513_v13  ;;  %v519_v32 = vshll.u32 %v1066_v51, %v510_v48 }
  0xde   : > { %v1273_v22 = vmul.u32.u64.low %v1261_v42, %v439_v20  ;;  %v1274_v26 = vmul.u32.u64.high %v1261_v42, %v439_v20, %v1273_v22  ;;  %v1277_v27 = vmul.u32.u64.low %v1261_v42, %v435_v19  ;;  %v1278_v28 = vmul.u32.u64.high %v1261_v42, %v435_v19, %v1277_v27 }
  0xdf   : > { %v518_v31 = vor.u32 %v517_v21, %v516_v17  ;;  %v520_v33 = vshrl.u32 %v1067_v53, %v511_v3  ;;  %v522_v34 = vshll.u32 %v1067_v53, %v510_v48  ;;  %v523_v35 = vshrl.u32 %v1068_v55, %v511_v3 }
  0xe0   : > { %v526_v36 = vshrl.u32 %v1069_v62, %v511_v3  ;;  %v447_v38 = vmul.u32 %v1261_v42, %v431_v18  ;;  %v512_v39 = vshrl.u32 %v1064_v45, %v511_v3  ;;  %v525_v41 = vshll.u32 %v1068_v55, %v510_v48 }
  0xe1   : > { %v521_v40 = vor.u32 %v520_v33, %v519_v32  ;;  %vm449_vm6 = vc.u32 %v1274_v26, %v1277_v27  ;;  %v450_v44 = vadd.s32 1, %v1278_v28  ;;  %v524_v46 = vor.u32 %v523_v35, %v522_v34 }
  0xe2   : > { %vm528_vm7 = vcmp.lt.s32.totalorder %v1264_v47, 1  ;;  %v527_v49 = vor.u32 %v526_v36, %v525_v41  ;;  %vm530_vm8 = vcmp.lt.s32.totalorder %v1264_v47, 3  ;;  %vm531_vm9 = vcmp.lt.s32.totalorder %v1264_v47, 4 }
  0xe3   : > { %v536_v50 = vsel %vm528_vm7, %v515_v29, %v518_v31  ;;  %v451_v43 = vsel %vm449_vm6, %v450_v44, %v1278_v28  ;;  %v533_v51 = vsel %vm531_vm9, %v521_v40, 2102212464  ;;  %v537_v42 = vsel %vm531_vm9, %v524_v46, 920167782 }
  0xe4   : > { %v540_v45 = vsel %vm528_vm7, %v518_v31, %v521_v40  ;;  %v452_v52 = vadd.s32 %v451_v43, %v447_v38  ;;  %vm529_vm10 = vcmp.lt.s32.totalorder %v1264_v47, 2  ;;  %v538_v48 = vsel %vm530_vm8, %v521_v40, %v537_v42 }
  0xe5   : > { %v541_v53 = vsel %vm531_vm9, %v527_v49, 1326507024  ;;  %v532_v54 = vsel %vm528_vm7, %v512_v39, %v515_v29  ;;  %v534_v55 = vsel %vm530_vm8, %v518_v31, %v533_v51  ;;  %v539_v56 = vsel %vm529_vm10, %v536_v50, %v538_v48 }
  0xe6   : > { %v542_v57 = vsel %vm530_vm8, %v524_v46, %v541_v53  ;;  %v453_v58 = vadd.s32 536870912, %v452_v52  ;;  %v1288_v60 = vmul.u32.u64.low %v544_v37, %v539_v56  ;;  %v1289_v61 = vmul.u32.u64.high %v544_v37, %v539_v56, %v1288_v60 }
  0xe7   : > { %v543_v59 = vsel %vm529_vm10, %v540_v45, %v542_v57  ;;  %v535_v1 = vsel %vm529_vm10, %v532_v54, %v534_v55  ;;  %v448_v17 = vadd.s32 %v1277_v27, %v1274_v26  ;;  %vm484_vm5 = vweird.f32 %v1247_v23 }
  0xe8   : > { %v1291_v62 = vmul.u32.u64.low %v544_v37, %v543_v59  ;;  %v1292_v63 = vmul.u32.u64.high %v544_v37, %v543_v59, %v1291_v62  ;;  %v454_v0 = vshrl.u32 %v453_v58, 30  ;;  %v554_v3 = vadd.s32 1, %v1289_v61 }
  0xe9   : > { %v551_v47 = vmul.u32 %v544_v37, %v535_v1  ;;  %vm588_vm9 = vweird.f32 %v1249_v24 }
  0xea   : > { %v455_v2 = vshll.u32 %v454_v0, 30  ;;  %vm553_vm11 = vc.u32 %v1292_v63, %v1288_v60  ;;  %v552_v38 = vadd.s32 %v1288_v60, %v1292_v63  ;;  %v478_v27 = vsub.s32 4, %v454_v0 }
  0xeb   : > { %v555_v5 = vsel %vm553_vm11, %v554_v3, %v1289_v61 }
  0xec   : > { %v456_v4 = vsub.s32 %v452_v52, %v455_v2  ;;  %v556_v6 = vadd.s32 %v555_v5, %v551_v47  ;;  %v479_v42 = vsel %vm394_vm14, %v478_v27, %v454_v0 }
  0xed   : > { %v481_v48 = vsel %vm393_vm15, 0, %v479_v42 }
  0xee   : > { %v458_v7 = vsub.s32 0, %v456_v4  ;;  %v557_v8 = vadd.s32 536870912, %v556_v6  ;;  %v485_v57 = vadd.s32 3, %v481_v48 }
  0xf0   : > { %v808_v9 = vmin.u32 %v458_v7, %v456_v4  ;;  %v558_v10 = vshrl.u32 %v557_v8, 30  ;;  %v486_v60 = vand.u32 3, %v485_v57 }
  0xf2   : > { %v460_v11 = vclz %v808_v9  ;;  %v559_v12 = vshll.u32 %v558_v10, 30  ;;  %v582_v56 = vsub.s32 4, %v558_v10  ;;  %vm491_vm2 = vcmp.eq.s32.totalorder %v486_v60, 2 }
  0xf3   : > { %vm488_vm3 = vcmp.eq.s32.totalorder %v486_v60, 0  ;;  %vm487_vm4 = vcmp.lt.s32.totalorder %v486_v60, 2 }
  0xf4   : > { %v809_v13 = vadd.s32 4294967294, %v460_v11  ;;  %v560_v14 = vsub.s32 %v556_v6, %v559_v12  ;;  %v583_v59 = vsel %vm498_vm0, %v582_v56, %v558_v10 }
  0xf5   : > { %v585_v63 = vsel %vm497_vm1, 0, %v583_v59 }
  0xf6   : > { %vm810_vm12 = vcmp.lt.s32.totalorder %v809_v13, 0  ;;  %v562_v16 = vsub.s32 0, %v560_v14  ;;  %v589_v47 = vadd.s32 3, %v585_v63 }
  0xf7   : > { %v463_v15 = vsel %vm810_vm12, 0, %v809_v13 }
  0xf8   : > { %v464_v18 = vsub.s32 32, %v463_v15  ;;  %v468_v19 = vsub.s32 4294967266, %v463_v15  ;;  %v812_v20 = vmin.u32 %v562_v16, %v560_v14  ;;  %v465_v21 = vshll.u32 %v456_v4, %v463_v15 }
  0xf9   : > { %v590_v6 = vand.u32 3, %v589_v47 }
  0xfa   : > { %v466_v22 = vshrl.u32 %v448_v17, %v464_v18  ;;  %v469_v28 = vadd.s32 127, %v468_v19  ;;  %v564_v29 = vclz %v812_v20 }
  0xfb   : > { %vm595_vm6 = vcmp.eq.s32.totalorder %v590_v6, 2  ;;  %vm592_vm7 = vcmp.eq.s32.totalorder %v590_v6, 0  ;;  %vm591_vm8 = vcmp.lt.s32.totalorder %v590_v6, 2 }
  0xfc   : > { %v467_v31 = vor.u32 %v466_v22, %v465_v21  ;;  %v470_v32 = vshll.u32 %v469_v28, 23  ;;  %v813_v33 = vadd.s32 4294967294, %v564_v29 }
  0xfe   : > { %v471_v34 = vor.u32 4788187, %v470_v32  ;;  %vm814_vm13 = vcmp.lt.s32.totalorder %v813_v33, 0  ;;  %v474_v36 = vcvt.s32.f32 %v467_v31 }
  0xff   : > { %v567_v37 = vsel %vm814_vm13, 0, %v813_v33 }
 0x100   : > { %v472_v35 = vand.u32 2147483647, %v471_v34  ;;  %v568_v39 = vsub.s32 32, %v567_v37  ;;  %v572_v40 = vsub.s32 4294967266, %v567_v37  ;;  %v569_v41 = vshll.u32 %v560_v14, %v567_v37 }
 0x102   : > { %v475_v26 = vmul.f32 %v474_v36, %v472_v35  ;;  %v570_v44 = vshrl.u32 %v552_v38, %v568_v39  ;;  %v573_v46 = vadd.s32 127, %v572_v40 }
 0x104   : > { %v476_v49 = vxor.u32 2147483648, %v475_v26  ;;  %v571_v50 = vor.u32 %v570_v44, %v569_v41  ;;  %v574_v43 = vshll.u32 %v573_v46, 23 }
 0x106   : > { %v477_v51 = vsel %vm394_vm14, %v476_v49, %v475_v26  ;;  %v575_v52 = vor.u32 4788187, %v574_v43  ;;  %v578_v54 = vcvt.s32.f32 %v571_v50 }
 0x107   : > { %v480_v45 = vsel %vm393_vm15, %v1247_v23, %v477_v51 }
 0x108   : > { %910 = vcosq.f32 %v480_v45  ;;  %v576_v53 = vand.u32 2147483647, %v575_v52 }
 0x109   : > { %912 = vsinq.f32 %v480_v45 }
 0x10a   : > { %v579_v55 = vmul.f32 %v578_v54, %v576_v53 }
 0x10c   : > { %v580_v58 = vxor.u32 2147483648, %v579_v55 }
 0x10e   : > { %v581_v25 = vsel %vm498_vm0, %v580_v58, %v579_v55 }
 0x10f   : > { %v584_v61 = vsel %vm497_vm1, %v1249_v24, %v581_v25 }
 0x110   : > { %914 = vcosq.f32 %v584_v61 }
 0x111   : > { %916 = vsinq.f32 %v584_v61 }
 0x112   : > { %v911_v62 = vpop.eup %910 }
 0x113   : > { %v913_v0 = vpop.eup %912  ;;  %v492_v1 = vxor.u32 2147483648, %v911_v62 }
 0x114   : > { %v489_v2 = vxor.u32 2147483648, %v913_v0 }
 0x115   : > { %v493_v3 = vsel %vm491_vm2, %v492_v1, %v913_v0 }
 0x116   : > { %v490_v4 = vsel %vm488_vm3, %v911_v62, %v489_v2 }
 0x117   : > { %v494_v30 = vsel %vm487_vm4, %v490_v4, %v493_v3 }
 0x118   : > { %v495_v5 = vsel %vm484_vm5, nan, %v494_v30 }
 0x119   : > { %600 = vst [vmem:[#allocation6] sm:$0xff] %v495_v5 }
 0x11a   : > { %v915_v7 = vpop.eup %914 }
 0x11b   : > { %v917_v8 = vpop.eup %916  ;;  %v596_v9 = vxor.u32 2147483648, %v915_v7 }
 0x11c   : > { %v593_v10 = vxor.u32 2147483648, %v917_v8 }
 0x11d   : > { %v597_v11 = vsel %vm595_vm6, %v596_v9, %v917_v8 }
 0x11e   : > { %v594_v12 = vsel %vm592_vm7, %v915_v7, %v593_v10 }
 0x11f   : > { %v598_v13 = vsel %vm591_vm8, %v594_v12, %v597_v11 }
 0x120   : > { %v599_v14 = vsel %vm588_vm9, nan, %v598_v13 }
 0x121   : > { %601 = vst [vmem:[#allocation6 + $0x8] sm:$0xff] %v599_v14 }
 0x122 PF: > { %v602_v23 = vld [vmem:[%s1223_s12] sm:$0xff]  ;;  %v603_v16 = vld [vmem:[%s1223_s12 + $0x8] sm:$0xff]  ;;  %s823_s28 = sshll.u32 %s1052_s21, 8  ;;  %s629_s13 = sshll.u32 %s1229_s15, 4  ;;  %s1318_s13 = int_to_ptr.vmem [resolvable:$true] %s629_s13 }
 0x123   : > { %v604_v15 = vld [vmem:[#allocation6] sm:$0xff]  ;;  %s1315_s25 = scalar_lea.hbm %s1396_s4, %s823_s28  ;;  %s1070_s6 = smov [#allocation6]  }
 0x124   : > { %v606_v17 = vadd.f32 %v604_v15, %v602_v23  ;;  %s1322_s10 = sshll.u32 %s1070_s6, 4  ;;  %s611_s21 = scalar_lea.sflag [#allocation4], %s1219_s27  ;;  %s646_s10 = int_to_ptr.vmem [resolvable:$true] %s1322_s10 }
 0x125   : > { %s948_s12 = scalar_lea.vmem %s1318_s13, 256  ;;  %p1409_p9 = scmp.ne.s32.totalorder %s1404_s7, 0 }
 0x126   : > { %608 = vst [vmem:[%s1229_s15] sm:$0xff] %v606_v17  ;;  %p949_p8 = scmp.ne.s32.totalorder %s1318_s13, %s948_s12  ;;  %s1071_s14 = smov [#allocation5]  }
 0x127   : > { %s952_s16 = sshll.u32 %s1071_s14, 4  ;;  %s953_s16 = int_to_ptr.vmem [resolvable:$false] %s952_s16 }
 0x128   : > { %v605_v18 = vld [vmem:[#allocation6 + $0x8] sm:$0xff]  ;;  %p950_p0 = pnand %p949_p8, %p1409_p9  ;;  %s954_s29 = scalar_lea.vmem %s953_s16, 512 }
 0x129   : > { %v607_v24 = vadd.f32 %v605_v18, %v603_v16  ;;  %p955_p10 = scmp.lt.s32.totalorder %s1318_s13, %s953_s16  ;;  %p956_p3 = scmp.lt.s32.totalorder %s954_s29, %s948_s12 }
 0x12a   : > { %p951_p5 = pneg %p950_p0 }
 0x12b   : > { %609 = vst [vmem:[%s1229_s15 + $0x8] sm:$0xff] %v607_v24  ;;  %p957_p7 = por %p956_p3, %p955_p10 }
 0x12d   : > { %p958_p4 = pnand %p957_p7, %p951_p5 }
 0x12f   : > { %961 = shalt.err (!%p958_p4)
}
 0x130   : > { %s962_s27 = scalar_lea.hbm %s1315_s25, 256  ;;  %s966_s28 = scalar_lea.hbm %s1396_s4, 512 }
 0x131   : > { %p963_p13 = scmp.ne.s32.totalorder %s1315_s25, %s962_s27  ;;  %p967_p1 = scmp.lt.u32.totalorder %s1315_s25, %s1396_s4 }
 0x132   : > { %p968_p2 = scmp.lt.u32.totalorder %s966_s28, %s962_s27  ;;  %p970_p8 = scmp.lt.u32.totalorder %s962_s27, %s1315_s25 }
 0x133   : > { %p964_p12 = pnand %p963_p13, %p1409_p9 }
 0x134   : > { %p969_p6 = por %p968_p2, %p967_p1 }
 0x135   : > { %p965_p11 = pneg %p964_p12 }
 0x136   : > { %p971_p0 = por %p970_p8, %p969_p6 }
 0x138   : > { %p972_p5 = pnand %p971_p0, %p965_p11 }
 0x13a   : > { %975 = shalt.err (!%p972_p5)
}
 0x13b   : > { %834 = dma.vmem_to_hbm [thread:$0]  (%p1409_p9), %s1318_s13, 256, %s1315_s25, %s611_s21  }
 0x13c   : > { %s976_s6 = scalar_lea.vmem %s646_s10, 256  ;;  %p1410_p3 = scmp.ne.s32.totalorder %s1402_s30, 0 }
 0x13d   : > { %p977_p10 = scmp.ne.s32.totalorder %s646_s10, %s976_s6  ;;  %p983_p13 = scmp.lt.s32.totalorder %s646_s10, %s646_s10 }
 0x13e   : > { %p984_p12 = scmp.lt.s32.totalorder %s976_s6, %s976_s6 }
 0x13f   : > { %p978_p7 = pnand %p977_p10, %p1410_p3 }
 0x140   : > { %p985_p1 = por %p984_p12, %p983_p13 }
 0x141   : > { %p979_p4 = pneg %p978_p7 }
 0x143   : > { %p986_p2 = pnand %p985_p1, %p979_p4 }
 0x145   : > { %989 = shalt.err (!%p986_p2)
}
 0x146   : > { %s990_s7 = scalar_lea.hbm %s1397_s5, 256 }
 0x147   : > { %p991_p9 = scmp.ne.s32.totalorder %s1397_s5, %s990_s7  ;;  %p996_p8 = scmp.lt.u32.totalorder %s990_s7, %s1397_s5 }
 0x149   : > { %p992_p11 = pnand %p991_p9, %p1410_p3 }
 0x14b   : > { %p993_p6 = pneg %p992_p11 }
 0x14d   : > { %p998_p0 = pnand %p996_p8, %p993_p6 }
 0x14f   : > { %1001 = shalt.err (!%p998_p0)
}
 0x150   : > { %836 = dma.vmem_to_hbm [thread:$0]  (%p1410_p3), %s646_s10, 256, %s1397_s5, [#allocation7]  }
 0x151   : > { %1031 = dma.done.wait (%p1410_p3), [#allocation7], 256  }
 0x152   : > { %1033 = vsyncadd (%p1410_p3), [#allocation7], 4294967040 }
 0x153 PF: > { %s661_s15 = sand.u32 1, %s1040_s18   ;;  %p1411_p5 = scmp.ne.s32.totalorder %s1405_s9, 0 }
 0x154   : > { %p1412_p10 = scmp.ge.s32.totalorder %s1060_s23, 2  ;;  %s662_s11 = scalar_lea.sflag [#allocation4], %s661_s15 }
 0x156   : > { %p845_p7 = pnand %p1412_p10, %p1411_p5 }
 0x158   : > { %1035 = dma.done.wait (!%p845_p7), %s662_s11, 256  }
 0x159   : > { %1037 = vsyncadd (!%p845_p7), %s662_s11, 4294967040  ;;  %s23_s23 = sadd.s32 1, %s1060_s23   ;;  %s1413_s18 = smov %s1044_s19 }
 0x15a   : > { %p20_p4 = scmp.ge.s32.totalorder %s23_s23, 4   ;;  %s1414_s19 = smov %s1048_s20 }
 0x15b   : > { %s1415_s20 = smov %s1164_s8  ;;  %s1416_s21 = smov %s1056_s22 }
 0x15c   : > { %s1417_s22 = smov %s1419_s26  ;;  %22 = sbr.rel (!%p20_p4) target bundleno = 7 (0x7), region = 105 }
 0x163   :  { %667 = vsyncpa [#allocation3], 1 }
 0x164   :  { %669 = vsyncpa [#allocation3 + $0x1], 1 }
 0x165   :  { %670 = vsyncpa [#allocation4], 1 }
 0x166   :  { %672 = vsyncpa [#allocation4 + $0x1], 1 }
 0x167   :  { %673 = vsyncpa [#allocation7], 1 }

</bundles_post_ra>
